<compile_context>
chip_gen: v7x
topology: tpu7x:2x2x1
jax: 0.10.0
libtpu: 0.0.40
codegen_flags: <defaults>
</compile_context>

<pallas_src>
import jax
import jax.numpy as jnp
from jax.experimental import pallas as pl
from jax.experimental.pallas import tpu as pltpu

_MAX_INFLIGHT_DMAS = 4       # a few DMAs in flight hides issue latency / uses engines
_MIN_CHUNK_BYTES = 1 << 20   # don't split copies below ~1 MiB


def _chunk_bounds(rows, lanes, itemsize):
    """Static, balanced (start, size) row-chunks for the HBM->HBM copy."""
    total_bytes = rows * lanes * itemsize
    n_chunks = max(1, min(_MAX_INFLIGHT_DMAS, total_bytes // _MIN_CHUNK_BYTES, rows))
    chunk_rows = -(-rows // n_chunks)  # ceil division -> balanced chunks
    if chunk_rows < rows:
        # Keep chunk starts on 8-row (sublane-tile) boundaries.
        chunk_rows = ((chunk_rows + 7) // 8) * 8
    bounds = []
    start = 0
    while start < rows:
        size = min(chunk_rows, rows - start)
        bounds.append((start, size))
        start += size
    return bounds


def _dma_copy_2d(x2d):
    """Copy a (rows, lanes) array via direct HBM->HBM DMAs inside a Pallas kernel."""
    rows, lanes = x2d.shape
    itemsize = jnp.dtype(x2d.dtype).itemsize
    bounds = _chunk_bounds(rows, lanes, itemsize)
    n = len(bounds)

    def kernel(x_hbm, o_hbm, sems):
        copies = []
        for i, (s, sz) in enumerate(bounds):  # static chunk list
            cp = pltpu.make_async_copy(
                x_hbm.at[pl.ds(s, sz), :],
                o_hbm.at[pl.ds(s, sz), :],
                sems.at[i],
            )
            cp.start()
            copies.append(cp)
        for cp in copies:  # all chunks in flight; now drain
            cp.wait()

    return pl.pallas_call(
        kernel,
        out_shape=jax.ShapeDtypeStruct((rows, lanes), x2d.dtype),
        in_specs=[pl.BlockSpec(memory_space=pl.ANY)],
        out_specs=pl.BlockSpec(memory_space=pl.ANY),
        scratch_shapes=[pltpu.SemaphoreType.DMA((n,))],
        cost_estimate=pl.CostEstimate(
            flops=0,
            transcendentals=0,
            bytes_accessed=2 * rows * lanes * itemsize,
        ),
    )(x2d)


def reshape_forward(x, c, h, w):
    """Equivalent of PyTorch Reshape(c, h, w).forward(x) = x.view(-1, c, h, w)."""
    total = x.size
    chw = c * h * w
    assert total % chw == 0, "input size must be divisible by c*h*w"
    batch = total // chw

    # Lane-dense 2D factorization of the flat element stream. The direct DMA
    # has no (8,128) BlockSpec constraint; this only gives the copy clean,
    # tile-aligned chunk boundaries. Exact factorization -> zero padding.
    lanes = 0
    for cand in (2048, 1024, 512, 256, 128):
        if total % cand == 0:
            lanes = cand
            break
    if lanes == 0:
        rows, lanes = 1, total  # odd sizes: single full-array DMA
    else:
        rows = total // lanes

    x2d = x.reshape(rows, lanes)  # metadata-only for contiguous input
    out2d = _dma_copy_2d(x2d)
    return out2d.reshape(batch, c, h, w)  # metadata-only view of the kernel output


if __name__ == "__main__":
    key = jax.random.PRNGKey(0)

    # Small NCHW-ish input matching the module: Reshape(c=4, h=16, w=16)
    x = jax.random.normal(key, (2, 4, 16, 16), dtype=jnp.float32)
    c, h, w = 4, 16, 16
    out = jax.block_until_ready(reshape_forward(x, c, h, w))
    ref = x.reshape(-1, c, h, w)
    assert out.shape == ref.shape, (out.shape, ref.shape)
    assert out.dtype == ref.dtype
    assert jnp.array_equal(out, ref)

    # Larger input exercising the multi-chunk (multiple DMAs in flight) path.
    x_big = jax.random.normal(key, (64, 4, 64, 64), dtype=jnp.float32)  # 4 MiB
    out_big = jax.block_until_ready(reshape_forward(x_big, 4, 64, 64))
    assert jnp.array_equal(out_big, x_big.reshape(-1, 4, 64, 64))

    # Odd element count exercising the single full-array DMA fallback.
    x_odd = jax.random.normal(key, (3, 3, 5, 7), dtype=jnp.float32)
    out_odd = jax.block_until_ready(reshape_forward(x_odd, 3, 5, 7))
    assert jnp.array_equal(out_odd, x_odd.reshape(-1, 3, 5, 7))

    print("KERNEL_OK")
</pallas_src>

<mosaic_0001>
module attributes {stable_mosaic.version = 11 : i64} {
  func.func @kernel(%arg0: memref<1x2048xf32, #tpu.memory_space<any>>, %arg1: memref<1x2048xf32, #tpu.memory_space<any>>, %arg2: memref<1x!tpu.dma_semaphore, #tpu.memory_space<semaphore_mem>>) attributes {dimension_semantics = [], scalar_prefetch = 0 : i64, scratch_operands = 1 : i64, tpu.core_type = #tpu.core_type<tc>} {
    %c0_i32 = arith.constant 0 : i32
    %c0_i32_0 = arith.constant 0 : i32
    %c0_i32_1 = arith.constant 0 : i32
    %0 = tpu.memref_slice %arg0[%c0_i32_0, %c0_i32_1] : memref<1x2048xf32, #tpu.memory_space<any>> -> memref<1x2048xf32, #tpu.memory_space<any>>
    %c0_i32_2 = arith.constant 0 : i32
    %c0_i32_3 = arith.constant 0 : i32
    %1 = tpu.memref_slice %arg1[%c0_i32_2, %c0_i32_3] : memref<1x2048xf32, #tpu.memory_space<any>> -> memref<1x2048xf32, #tpu.memory_space<any>>
    %2 = tpu.memref_slice %arg2[%c0_i32] : memref<1x!tpu.dma_semaphore, #tpu.memory_space<semaphore_mem>> -> memref<1x!tpu.dma_semaphore, #tpu.memory_space<semaphore_mem>>
    %3 = tpu.memref_squeeze %2 : memref<1x!tpu.dma_semaphore, #tpu.memory_space<semaphore_mem>> -> memref<!tpu.dma_semaphore, #tpu.memory_space<semaphore_mem>>
    tpu.enqueue_dma source(%0 : memref<1x2048xf32, #tpu.memory_space<any>>) target(%1 : memref<1x2048xf32, #tpu.memory_space<any>>) target_semaphore(%3 : memref<!tpu.dma_semaphore, #tpu.memory_space<semaphore_mem>>)
    %c0_i32_4 = arith.constant 0 : i32
    %c0_i32_5 = arith.constant 0 : i32
    %c0_i32_6 = arith.constant 0 : i32
    %4 = tpu.memref_slice %arg0[%c0_i32_5, %c0_i32_6] : memref<1x2048xf32, #tpu.memory_space<any>> -> memref<1x2048xf32, #tpu.memory_space<any>>
    %c0_i32_7 = arith.constant 0 : i32
    %c0_i32_8 = arith.constant 0 : i32
    %5 = tpu.memref_slice %arg1[%c0_i32_7, %c0_i32_8] : memref<1x2048xf32, #tpu.memory_space<any>> -> memref<1x2048xf32, #tpu.memory_space<any>>
    %6 = tpu.memref_slice %arg2[%c0_i32_4] : memref<1x!tpu.dma_semaphore, #tpu.memory_space<semaphore_mem>> -> memref<1x!tpu.dma_semaphore, #tpu.memory_space<semaphore_mem>>
    %7 = tpu.memref_squeeze %6 : memref<1x!tpu.dma_semaphore, #tpu.memory_space<semaphore_mem>> -> memref<!tpu.dma_semaphore, #tpu.memory_space<semaphore_mem>>
    tpu.wait_dma2 semaphore(%7 : memref<!tpu.dma_semaphore, #tpu.memory_space<semaphore_mem>>) src(%4 : memref<1x2048xf32, #tpu.memory_space<any>>) dst(%5 : memref<1x2048xf32, #tpu.memory_space<any>>)
    return
  }
}

</mosaic_0001>

<bundles_post_ra>
// kernel: tpu_custom_call.1
= control target key start
LH: loop header
LB: loop body
LE: loop exit
PB: predicated region body
PF: predicated region fallthrough
CT: control target
= control target key end

     0   :  { %s34_s6 = smov [#allocation2]   ;;  %s35_s7 = smov [#allocation3]   ;;  %s53_s0 = inlined_call_operand.hbm [shape: f32[1,2048], index: 0, kind: input, shape index: {}]   ;;  %s54_s1 = inlined_call_operand.hbm [shape: f32[1,2048], index: 1, kind: output, shape index: {}]  }
   0x1   :  { %s36_s8 = smov 0  }
   0x2   :  { %18 = dma.general %s53_s0, 256, %s54_s1, %s34_s6, %s35_s7, [#allocation4], %s36_s8, 0  }
   0x3   :  { %32 = dma.done.wait [#allocation2], 256 }
   0x4   :  { %33 = vsyncadd [#allocation2], 4294967040 }
   0x5   :  { %22 = vsyncmov [#allocation2] }
   0x8   :  { %s23_s13 = vpop.sfrf %22 }
   0x9   :  { %p28_p0 = scmp.ne.s32.totalorder %s23_s13, 0 }
   0xb   :  { %27 = shalt.err (%p28_p0)  }

</bundles_post_ra>
